<compile_context>
chip_gen: v7x
topology: tpu7x:2x2x1
jax: 0.10.0
libtpu: 0.0.40
codegen_flags: <defaults>
</compile_context>

<pallas_src>
import functools

import jax
import jax.numpy as jnp
from jax.experimental import pallas as pl
from jax.experimental.pallas import tpu as pltpu

KERNEL_SIZES = (3, 4, 5)
KMAX = max(KERNEL_SIZES)
KMIN = min(KERNEL_SIZES)
NBRANCH = len(KERNEL_SIZES)
LANE = 128

# Row layout of the packed (NROWS, C) parameter table kept in SMEM.
ROW_W = 0                          # rows [0, 15): conv weight, row j*KMAX + k
ROW_CB = NBRANCH * KMAX            # rows [15, 18): conv bias of branch j
ROW_WFC = ROW_CB + NBRANCH         # rows [18, 21): fc-weight chunk of branch j
ROW_FCB = ROW_WFC + NBRANCH        # row 21, col 0 : fc bias
NROWS = ROW_FCB + 1


def _round_up(x, m):
    return (x + m - 1) // m * m


def _fused_kernel(ptab_ref, taps_ref, out_ref, *, seq_len, n_channels):
    """Conv1d(1,C,K) x3 + ReLU + global max-pool + fc(3C -> 1), one batch block.

    Layout: time on sublanes, batch on lanes.

    ptab_ref : (NROWS, C) f32 in SMEM   packed conv/fc weights + biases (see ROW_*).
    taps_ref : (KMAX, TP, BB) f32       taps_ref[k, t, b] = seq[b, t + k]
                                        (zero beyond the real sequence; masked).
    out_ref  : (1, 1, BB) f32           lane-dense output row for this batch block.
    """
    tp = taps_ref.shape[1]
    bb = taps_ref.shape[2]

    # Sublane (time) index, shared by all branches.  Invalid conv-output rows get
    # -1e30 so the max-pool ignores them; bias/ReLU are applied AFTER the pool, so
    # the mask must be "very negative", not 0.
    t_idx = jax.lax.broadcasted_iota(jnp.int32, (tp, bb), 0)

    out_acc = jnp.zeros((1, bb), jnp.float32)

    for j, K in enumerate(KERNEL_SIZES):
        n_valid = seq_len - K + 1                       # valid conv output rows
        mask_j = jnp.where(t_idx < n_valid, 0.0, -1e30).astype(jnp.float32)

        def body(c, acc_out, j=j, K=K, mask_j=mask_j):
            # Conv for one output channel: scalar weights (SMEM) x (TP, BB) taps.
            # The -1e30 time mask is folded into the accumulator init (free pass).
            acc = mask_j + taps_ref[0] * ptab_ref[ROW_W + j * KMAX, c]
            for k in range(1, K):
                acc = acc + taps_ref[k] * ptab_ref[ROW_W + j * KMAX + k, c]
            m = jnp.max(acc, axis=0, keepdims=True)              # (1, BB) max-pool
            pooled = jnp.maximum(m + ptab_ref[ROW_CB + j, c], 0.0)   # bias + ReLU
            return acc_out + pooled * ptab_ref[ROW_WFC + j, c]       # fold fc weight

        out_acc = jax.lax.fori_loop(0, n_channels, body, out_acc)

    out_ref[...] = (out_acc + ptab_ref[ROW_FCB, 0])[None]           # (1, 1, BB)


def embedding_trainer_forward(idx, feats, params, *, block_b=256):
    """Forward pass matching EmdeddingTrainer.forward((idx, x))."""
    emb_tbl = params["emb"]
    wfc, bfc = params["wfc"], params["bfc"]
    assert wfc.shape[0] == 1, "kernel assumes output_size == 1 (module default)"

    B = idx.shape[0]
    E = emb_tbl.shape[1]
    F = feats.shape[1]
    L = E + F
    C = params[f"w{KERNEL_SIZES[0]}"].shape[0]
    assert wfc.shape[1] == NBRANCH * C
    assert L >= KMAX, "sequence must be at least as long as the largest conv kernel"

    # Batch block: multiple of 128 (lane-dense output), capped so larger batches
    # still produce >= 2 "parallel" grid steps (v7x has 2 TensorCores).
    block_b = _round_up(max(block_b, 1), LANE)
    block_b = max(LANE, min(block_b, _round_up(-(-B // 2), LANE)))

    TP = _round_up(L - KMIN + 1, 8)          # padded conv-output length (sublanes)
    BP = _round_up(B, block_b)
    G = BP // block_b

    # ---- host-side glue (XLA fuses gather + concat + pad + shift/stack) --------
    # TODO(synk): the embedding gather stays in the wrapper; fusing it in-kernel
    # would need a per-sample grid / pl.Element row indexing, which conflicts with
    # the 128-samples-on-lanes layout used here.
    emb_sel = jnp.take(emb_tbl, idx, axis=0).astype(jnp.float32)          # (B, E)
    seq = jnp.concatenate([emb_sel, feats.astype(jnp.float32)], axis=1)   # (B, L)
    seq = jnp.pad(seq, ((0, BP - B), (0, TP + KMAX - 1 - L)))             # (BP, TP+KMAX-1)
    # Shifted taps, transposed so time is on sublanes and batch on lanes.
    taps = jnp.stack([seq[:, k:k + TP] for k in range(KMAX)], axis=0)     # (KMAX, BP, TP)
    taps = jnp.transpose(taps, (0, 2, 1))                                 # (KMAX, TP, BP)

    # ---- pack all weights/biases into one small (NROWS, C) SMEM table ----------
    wrows = jnp.concatenate(
        [jnp.pad(params[f"w{K}"].astype(jnp.float32), ((0, 0), (0, KMAX - K))).T
         for K in KERNEL_SIZES], axis=0)                                  # (15, C)
    brows = jnp.concatenate(
        [params[f"b{K}"].astype(jnp.float32).reshape(1, C) for K in KERNEL_SIZES],
        axis=0)                                                           # (3, C)
    wfc_rows = wfc.astype(jnp.float32).reshape(NBRANCH, C)                # (3, C)
    fcb_row = jnp.zeros((1, C), jnp.float32).at[0, 0].set(
        bfc.astype(jnp.float32).reshape(()))                              # (1, C)
    ptab = jnp.concatenate([wrows, brows, wfc_rows, fcb_row], axis=0)     # (22, C)

    kernel = functools.partial(_fused_kernel, seq_len=L, n_channels=C)
    out = pl.pallas_call(
        kernel,
        out_shape=jax.ShapeDtypeStruct((G, 1, block_b), jnp.float32),
        grid=(G,),
        in_specs=[
            pl.BlockSpec(memory_space=pltpu.MemorySpace.SMEM),
            pl.BlockSpec((KMAX, TP, block_b), lambda i: (0, 0, i)),
        ],
        out_specs=pl.BlockSpec((1, 1, block_b), lambda i: (i, 0, 0)),
        compiler_params=pltpu.CompilerParams(
            dimension_semantics=("parallel",)),
    )(ptab, taps)

    return out.reshape(-1)[:B, None]                                      # (B, 1)


def init_params(key, total_players, embedding_dim,
                kernel_sizes=KERNEL_SIZES, output_size=1):
    """Deterministic synthetic parameters matching the module's __init__ shapes."""
    C = embedding_dim + 3
    fc_in = len(kernel_sizes) * embedding_dim + 3 * len(kernel_sizes)
    keys = jax.random.split(key, 2 * len(kernel_sizes) + 3)

    params = {
        "emb": jax.random.normal(keys[0], (total_players, embedding_dim), jnp.float32),
    }
    for i, K in enumerate(kernel_sizes):
        bound = 1.0 / (K ** 0.5)      # Conv1d default init range (fan_in = 1*K)
        params[f"w{K}"] = jax.random.uniform(
            keys[1 + 2 * i], (C, K), jnp.float32, -bound, bound)
        params[f"b{K}"] = jax.random.uniform(
            keys[2 + 2 * i], (1, C), jnp.float32, -bound, bound)
    bound = 1.0 / (fc_in ** 0.5)
    params["wfc"] = jax.random.uniform(
        keys[-2], (output_size, fc_in), jnp.float32, -bound, bound)
    params["bfc"] = jax.random.uniform(
        keys[-1], (1, output_size), jnp.float32, -bound, bound)
    return params


def reference_forward(idx, feats, params):
    """Pure-JAX reference mirroring the PyTorch forward, for correctness check."""
    emb_sel = params["emb"][idx]
    seq = jnp.concatenate([emb_sel, feats], axis=1)
    pooled = []
    for K in KERNEL_SIZES:
        w, b = params[f"w{K}"], params[f"b{K}"]
        T = seq.shape[1] - K + 1
        taps = jnp.stack([seq[:, k:k + T] for k in range(K)], axis=-1)   # (B, T, K)
        conv = jnp.einsum("btk,ck->bct", taps, w,
                          precision=jax.lax.Precision.HIGHEST) + b[:, :, None]
        pooled.append(jnp.max(jax.nn.relu(conv), axis=2))
    cat = jnp.concatenate(pooled, axis=1)
    return jnp.einsum("bi,oi->bo", cat, params["wfc"],
                      precision=jax.lax.Precision.HIGHEST) + params["bfc"]


if __name__ == "__main__":
    key = jax.random.PRNGKey(0)
    pkey, ikey, xkey = jax.random.split(key, 3)

    total_players = 16
    embedding_dim = 32          # E
    feature_len = 32            # F (length of the raw-feature vector x)
    batch = 16                  # B

    params = init_params(pkey, total_players, embedding_dim)
    idx = jax.random.randint(ikey, (batch,), 0, total_players, dtype=jnp.int32)
    feats = jax.random.normal(xkey, (batch, feature_len), jnp.float32)

    fwd = jax.jit(embedding_trainer_forward)
    out = jax.block_until_ready(fwd(idx, feats, params))

    ref = reference_forward(idx, feats, params)
    assert out.shape == (batch, 1), out.shape
    assert jnp.allclose(out, ref, atol=2e-4, rtol=2e-4), (out, ref)

    print("KERNEL_OK")
</pallas_src>

<mosaic_0001>
module attributes {stable_mosaic.version = 11 : i64} {
  func.func @_fused_kernel(%arg0: i32, %arg1: memref<22x35xf32, #tpu.memory_space<smem>>, %arg2: memref<5x64x128xf32, #tpu.memory_space<vmem>>, %arg3: memref<1x1x128xf32, #tpu.memory_space<vmem>>) attributes {dimension_semantics = [#tpu.dimension_semantics<parallel>], iteration_bounds = array<i64: 1>, scalar_prefetch = 0 : i64, scratch_operands = 0 : i64, tpu.core_type = #tpu.core_type<tc>, window_params = [{transform_indices = @transform_0, window_bounds = array<i64: 22, 35>}, {transform_indices = @transform_1, window_bounds = array<i64: 5, 64, 128>}, {transform_indices = @transform_2, window_bounds = array<i64: 1, 1, 128>}]} {
    %0 = tpu.iota {dimensions = array<i32: 0>} : vector<64x128xi32>
    %cst = arith.constant 0.000000e+00 : f32
    %1 = vector.broadcast %cst : f32 to vector<1x128xf32>
    %c62_i32 = arith.constant 62 : i32
    %2 = vector.broadcast %c62_i32 : i32 to vector<64x128xi32>
    %3 = arith.cmpi slt, %0, %2 : vector<64x128xi32>
    %cst_0 = arith.constant 0.000000e+00 : f32
    %cst_1 = arith.constant -1.000000e+30 : f32
    %4 = vector.broadcast %cst_0 : f32 to vector<64x128xf32>
    %5 = vector.broadcast %cst_1 : f32 to vector<64x128xf32>
    %6 = arith.select %3, %4, %5 : vector<64x128xi1>, vector<64x128xf32>
    %c0_i32 = arith.constant 0 : i32
    %c35_i32 = arith.constant 35 : i32
    %7 = arith.addi %c0_i32, %c35_i32 : i32
    %c1_i32 = arith.constant 1 : i32
    %8 = scf.for %arg4 = %c0_i32 to %7 step %c1_i32 iter_args(%arg5 = %1) -> (vector<1x128xf32>)  : i32 {
      %c0_18 = arith.constant 0 : index
      %c0_19 = arith.constant 0 : index
      %c0_20 = arith.constant 0 : index
      %28 = vector.load %arg2[%c0_18, %c0_19, %c0_20] : memref<5x64x128xf32, #tpu.memory_space<vmem>>, vector<1x64x128xf32>
      %29 = vector.shape_cast %28 : vector<1x64x128xf32> to vector<64x128xf32>
      %c0_21 = arith.constant 0 : index
      %30 = arith.index_cast %arg4 : i32 to index
      %31 = memref.load %arg1[%c0_21, %30] : memref<22x35xf32, #tpu.memory_space<smem>>
      %32 = vector.broadcast %31 : f32 to vector<64x128xf32>
      %33 = arith.mulf %29, %32 : vector<64x128xf32>
      %34 = arith.addf %6, %33 : vector<64x128xf32>
      %c1 = arith.constant 1 : index
      %c0_22 = arith.constant 0 : index
      %c0_23 = arith.constant 0 : index
      %35 = vector.load %arg2[%c1, %c0_22, %c0_23] : memref<5x64x128xf32, #tpu.memory_space<vmem>>, vector<1x64x128xf32>
      %36 = vector.shape_cast %35 : vector<1x64x128xf32> to vector<64x128xf32>
      %c1_24 = arith.constant 1 : index
      %37 = arith.index_cast %arg4 : i32 to index
      %38 = memref.load %arg1[%c1_24, %37] : memref<22x35xf32, #tpu.memory_space<smem>>
      %39 = vector.broadcast %38 : f32 to vector<64x128xf32>
      %40 = arith.mulf %36, %39 : vector<64x128xf32>
      %41 = arith.addf %34, %40 : vector<64x128xf32>
      %c2 = arith.constant 2 : index
      %c0_25 = arith.constant 0 : index
      %c0_26 = arith.constant 0 : index
      %42 = vector.load %arg2[%c2, %c0_25, %c0_26] : memref<5x64x128xf32, #tpu.memory_space<vmem>>, vector<1x64x128xf32>
      %43 = vector.shape_cast %42 : vector<1x64x128xf32> to vector<64x128xf32>
      %c2_27 = arith.constant 2 : index
      %44 = arith.index_cast %arg4 : i32 to index
      %45 = memref.load %arg1[%c2_27, %44] : memref<22x35xf32, #tpu.memory_space<smem>>
      %46 = vector.broadcast %45 : f32 to vector<64x128xf32>
      %47 = arith.mulf %43, %46 : vector<64x128xf32>
      %48 = arith.addf %41, %47 : vector<64x128xf32>
      %cst_28 = arith.constant dense<0xFF800000> : vector<128xf32>
      %49 = vector.multi_reduction <maximumf>, %48, %cst_28 [0] : vector<64x128xf32> to vector<128xf32>
      %50 = vector.shape_cast %49 : vector<128xf32> to vector<1x128xf32>
      %c15 = arith.constant 15 : index
      %51 = arith.index_cast %arg4 : i32 to index
      %52 = memref.load %arg1[%c15, %51] : memref<22x35xf32, #tpu.memory_space<smem>>
      %53 = vector.broadcast %52 : f32 to vector<1x128xf32>
      %54 = arith.addf %50, %53 : vector<1x128xf32>
      %cst_29 = arith.constant 0.000000e+00 : f32
      %55 = vector.broadcast %cst_29 : f32 to vector<1x128xf32>
      %56 = arith.maximumf %54, %55 : vector<1x128xf32>
      %c18 = arith.constant 18 : index
      %57 = arith.index_cast %arg4 : i32 to index
      %58 = memref.load %arg1[%c18, %57] : memref<22x35xf32, #tpu.memory_space<smem>>
      %59 = vector.broadcast %58 : f32 to vector<1x128xf32>
      %60 = arith.mulf %56, %59 : vector<1x128xf32>
      %61 = arith.addf %arg5, %60 : vector<1x128xf32>
      scf.yield %61 : vector<1x128xf32>
    }
    %c35_i32_2 = arith.constant 35 : i32
    %c61_i32 = arith.constant 61 : i32
    %9 = vector.broadcast %c61_i32 : i32 to vector<64x128xi32>
    %10 = arith.cmpi slt, %0, %9 : vector<64x128xi32>
    %cst_3 = arith.constant 0.000000e+00 : f32
    %cst_4 = arith.constant -1.000000e+30 : f32
    %11 = vector.broadcast %cst_3 : f32 to vector<64x128xf32>
    %12 = vector.broadcast %cst_4 : f32 to vector<64x128xf32>
    %13 = arith.select %10, %11, %12 : vector<64x128xi1>, vector<64x128xf32>
    %c0_i32_5 = arith.constant 0 : i32
    %c35_i32_6 = arith.constant 35 : i32
    %14 = arith.addi %c0_i32_5, %c35_i32_6 : i32
    %c1_i32_7 = arith.constant 1 : i32
    %15 = scf.for %arg4 = %c0_i32_5 to %14 step %c1_i32_7 iter_args(%arg5 = %8) -> (vector<1x128xf32>)  : i32 {
      %c0_18 = arith.constant 0 : index
      %c0_19 = arith.constant 0 : index
      %c0_20 = arith.constant 0 : index
      %28 = vector.load %arg2[%c0_18, %c0_19, %c0_20] : memref<5x64x128xf32, #tpu.memory_space<vmem>>, vector<1x64x128xf32>
      %29 = vector.shape_cast %28 : vector<1x64x128xf32> to vector<64x128xf32>
      %c5 = arith.constant 5 : index
      %30 = arith.index_cast %arg4 : i32 to index
      %31 = memref.load %arg1[%c5, %30] : memref<22x35xf32, #tpu.memory_space<smem>>
      %32 = vector.broadcast %31 : f32 to vector<64x128xf32>
      %33 = arith.mulf %29, %32 : vector<64x128xf32>
      %34 = arith.addf %13, %33 : vector<64x128xf32>
      %c1 = arith.constant 1 : index
      %c0_21 = arith.constant 0 : index
      %c0_22 = arith.constant 0 : index
      %35 = vector.load %arg2[%c1, %c0_21, %c0_22] : memref<5x64x128xf32, #tpu.memory_space<vmem>>, vector<1x64x128xf32>
      %36 = vector.shape_cast %35 : vector<1x64x128xf32> to vector<64x128xf32>
      %c6 = arith.constant 6 : index
      %37 = arith.index_cast %arg4 : i32 to index
      %38 = memref.load %arg1[%c6, %37] : memref<22x35xf32, #tpu.memory_space<smem>>
      %39 = vector.broadcast %38 : f32 to vector<64x128xf32>
      %40 = arith.mulf %36, %39 : vector<64x128xf32>
      %41 = arith.addf %34, %40 : vector<64x128xf32>
      %c2 = arith.constant 2 : index
      %c0_23 = arith.constant 0 : index
      %c0_24 = arith.constant 0 : index
      %42 = vector.load %arg2[%c2, %c0_23, %c0_24] : memref<5x64x128xf32, #tpu.memory_space<vmem>>, vector<1x64x128xf32>
      %43 = vector.shape_cast %42 : vector<1x64x128xf32> to vector<64x128xf32>
      %c7 = arith.constant 7 : index
      %44 = arith.index_cast %arg4 : i32 to index
      %45 = memref.load %arg1[%c7, %44] : memref<22x35xf32, #tpu.memory_space<smem>>
      %46 = vector.broadcast %45 : f32 to vector<64x128xf32>
      %47 = arith.mulf %43, %46 : vector<64x128xf32>
      %48 = arith.addf %41, %47 : vector<64x128xf32>
      %c3 = arith.constant 3 : index
      %c0_25 = arith.constant 0 : index
      %c0_26 = arith.constant 0 : index
      %49 = vector.load %arg2[%c3, %c0_25, %c0_26] : memref<5x64x128xf32, #tpu.memory_space<vmem>>, vector<1x64x128xf32>
      %50 = vector.shape_cast %49 : vector<1x64x128xf32> to vector<64x128xf32>
      %c8 = arith.constant 8 : index
      %51 = arith.index_cast %arg4 : i32 to index
      %52 = memref.load %arg1[%c8, %51] : memref<22x35xf32, #tpu.memory_space<smem>>
      %53 = vector.broadcast %52 : f32 to vector<64x128xf32>
      %54 = arith.mulf %50, %53 : vector<64x128xf32>
      %55 = arith.addf %48, %54 : vector<64x128xf32>
      %cst_27 = arith.constant dense<0xFF800000> : vector<128xf32>
      %56 = vector.multi_reduction <maximumf>, %55, %cst_27 [0] : vector<64x128xf32> to vector<128xf32>
      %57 = vector.shape_cast %56 : vector<128xf32> to vector<1x128xf32>
      %c16 = arith.constant 16 : index
      %58 = arith.index_cast %arg4 : i32 to index
      %59 = memref.load %arg1[%c16, %58] : memref<22x35xf32, #tpu.memory_space<smem>>
      %60 = vector.broadcast %59 : f32 to vector<1x128xf32>
      %61 = arith.addf %57, %60 : vector<1x128xf32>
      %cst_28 = arith.constant 0.000000e+00 : f32
      %62 = vector.broadcast %cst_28 : f32 to vector<1x128xf32>
      %63 = arith.maximumf %61, %62 : vector<1x128xf32>
      %c19 = arith.constant 19 : index
      %64 = arith.index_cast %arg4 : i32 to index
      %65 = memref.load %arg1[%c19, %64] : memref<22x35xf32, #tpu.memory_space<smem>>
      %66 = vector.broadcast %65 : f32 to vector<1x128xf32>
      %67 = arith.mulf %63, %66 : vector<1x128xf32>
      %68 = arith.addf %arg5, %67 : vector<1x128xf32>
      scf.yield %68 : vector<1x128xf32>
    }
    %c35_i32_8 = arith.constant 35 : i32
    %c60_i32 = arith.constant 60 : i32
    %16 = vector.broadcast %c60_i32 : i32 to vector<64x128xi32>
    %17 = arith.cmpi slt, %0, %16 : vector<64x128xi32>
    %cst_9 = arith.constant 0.000000e+00 : f32
    %cst_10 = arith.constant -1.000000e+30 : f32
    %18 = vector.broadcast %cst_9 : f32 to vector<64x128xf32>
    %19 = vector.broadcast %cst_10 : f32 to vector<64x128xf32>
    %20 = arith.select %17, %18, %19 : vector<64x128xi1>, vector<64x128xf32>
    %c0_i32_11 = arith.constant 0 : i32
    %c35_i32_12 = arith.constant 35 : i32
    %21 = arith.addi %c0_i32_11, %c35_i32_12 : i32
    %c1_i32_13 = arith.constant 1 : i32
    %22 = scf.for %arg4 = %c0_i32_11 to %21 step %c1_i32_13 iter_args(%arg5 = %15) -> (vector<1x128xf32>)  : i32 {
      %c0_18 = arith.constant 0 : index
      %c0_19 = arith.constant 0 : index
      %c0_20 = arith.constant 0 : index
      %28 = vector.load %arg2[%c0_18, %c0_19, %c0_20] : memref<5x64x128xf32, #tpu.memory_space<vmem>>, vector<1x64x128xf32>
      %29 = vector.shape_cast %28 : vector<1x64x128xf32> to vector<64x128xf32>
      %c10 = arith.constant 10 : index
      %30 = arith.index_cast %arg4 : i32 to index
      %31 = memref.load %arg1[%c10, %30] : memref<22x35xf32, #tpu.memory_space<smem>>
      %32 = vector.broadcast %31 : f32 to vector<64x128xf32>
      %33 = arith.mulf %29, %32 : vector<64x128xf32>
      %34 = arith.addf %20, %33 : vector<64x128xf32>
      %c1 = arith.constant 1 : index
      %c0_21 = arith.constant 0 : index
      %c0_22 = arith.constant 0 : index
      %35 = vector.load %arg2[%c1, %c0_21, %c0_22] : memref<5x64x128xf32, #tpu.memory_space<vmem>>, vector<1x64x128xf32>
      %36 = vector.shape_cast %35 : vector<1x64x128xf32> to vector<64x128xf32>
      %c11 = arith.constant 11 : index
      %37 = arith.index_cast %arg4 : i32 to index
      %38 = memref.load %arg1[%c11, %37] : memref<22x35xf32, #tpu.memory_space<smem>>
      %39 = vector.broadcast %38 : f32 to vector<64x128xf32>
      %40 = arith.mulf %36, %39 : vector<64x128xf32>
      %41 = arith.addf %34, %40 : vector<64x128xf32>
      %c2 = arith.constant 2 : index
      %c0_23 = arith.constant 0 : index
      %c0_24 = arith.constant 0 : index
      %42 = vector.load %arg2[%c2, %c0_23, %c0_24] : memref<5x64x128xf32, #tpu.memory_space<vmem>>, vector<1x64x128xf32>
      %43 = vector.shape_cast %42 : vector<1x64x128xf32> to vector<64x128xf32>
      %c12 = arith.constant 12 : index
      %44 = arith.index_cast %arg4 : i32 to index
      %45 = memref.load %arg1[%c12, %44] : memref<22x35xf32, #tpu.memory_space<smem>>
      %46 = vector.broadcast %45 : f32 to vector<64x128xf32>
      %47 = arith.mulf %43, %46 : vector<64x128xf32>
      %48 = arith.addf %41, %47 : vector<64x128xf32>
      %c3 = arith.constant 3 : index
      %c0_25 = arith.constant 0 : index
      %c0_26 = arith.constant 0 : index
      %49 = vector.load %arg2[%c3, %c0_25, %c0_26] : memref<5x64x128xf32, #tpu.memory_space<vmem>>, vector<1x64x128xf32>
      %50 = vector.shape_cast %49 : vector<1x64x128xf32> to vector<64x128xf32>
      %c13 = arith.constant 13 : index
      %51 = arith.index_cast %arg4 : i32 to index
      %52 = memref.load %arg1[%c13, %51] : memref<22x35xf32, #tpu.memory_space<smem>>
      %53 = vector.broadcast %52 : f32 to vector<64x128xf32>
      %54 = arith.mulf %50, %53 : vector<64x128xf32>
      %55 = arith.addf %48, %54 : vector<64x128xf32>
      %c4 = arith.constant 4 : index
      %c0_27 = arith.constant 0 : index
      %c0_28 = arith.constant 0 : index
      %56 = vector.load %arg2[%c4, %c0_27, %c0_28] : memref<5x64x128xf32, #tpu.memory_space<vmem>>, vector<1x64x128xf32>
      %57 = vector.shape_cast %56 : vector<1x64x128xf32> to vector<64x128xf32>
      %c14 = arith.constant 14 : index
      %58 = arith.index_cast %arg4 : i32 to index
      %59 = memref.load %arg1[%c14, %58] : memref<22x35xf32, #tpu.memory_space<smem>>
      %60 = vector.broadcast %59 : f32 to vector<64x128xf32>
      %61 = arith.mulf %57, %60 : vector<64x128xf32>
      %62 = arith.addf %55, %61 : vector<64x128xf32>
      %cst_29 = arith.constant dense<0xFF800000> : vector<128xf32>
      %63 = vector.multi_reduction <maximumf>, %62, %cst_29 [0] : vector<64x128xf32> to vector<128xf32>
      %64 = vector.shape_cast %63 : vector<128xf32> to vector<1x128xf32>
      %c17 = arith.constant 17 : index
      %65 = arith.index_cast %arg4 : i32 to index
      %66 = memref.load %arg1[%c17, %65] : memref<22x35xf32, #tpu.memory_space<smem>>
      %67 = vector.broadcast %66 : f32 to vector<1x128xf32>
      %68 = arith.addf %64, %67 : vector<1x128xf32>
      %cst_30 = arith.constant 0.000000e+00 : f32
      %69 = vector.broadcast %cst_30 : f32 to vector<1x128xf32>
      %70 = arith.maximumf %68, %69 : vector<1x128xf32>
      %c20 = arith.constant 20 : index
      %71 = arith.index_cast %arg4 : i32 to index
      %72 = memref.load %arg1[%c20, %71] : memref<22x35xf32, #tpu.memory_space<smem>>
      %73 = vector.broadcast %72 : f32 to vector<1x128xf32>
      %74 = arith.mulf %70, %73 : vector<1x128xf32>
      %75 = arith.addf %arg5, %74 : vector<1x128xf32>
      scf.yield %75 : vector<1x128xf32>
    }
    %c35_i32_14 = arith.constant 35 : i32
    %c21 = arith.constant 21 : index
    %c0 = arith.constant 0 : index
    %23 = memref.load %arg1[%c21, %c0] : memref<22x35xf32, #tpu.memory_space<smem>>
    %24 = vector.broadcast %23 : f32 to vector<1x128xf32>
    %25 = arith.addf %22, %24 : vector<1x128xf32>
    %26 = vector.shape_cast %25 : vector<1x128xf32> to vector<1x1x128xf32>
    %c0_15 = arith.constant 0 : index
    %c0_16 = arith.constant 0 : index
    %c0_17 = arith.constant 0 : index
    %27 = vector.load %arg3[%c0_15, %c0_16, %c0_17] : memref<1x1x128xf32, #tpu.memory_space<vmem>>, vector<1x1x128xf32>
    tpu.vector_store %arg3[%c0_15, %c0_16, %c0_17], %26 {strides = array<i32>} : memref<1x1x128xf32, #tpu.memory_space<vmem>>, vector<1x1x128xf32>,
    return
  }
  func.func @transform_0(%arg0: i32) -> (i32, i32) {
    %c0_i32 = arith.constant 0 : i32
    %c0_i32_0 = arith.constant 0 : i32
    %c0_i32_1 = arith.constant 0 : i32
    return %c0_i32, %c0_i32_0 : i32, i32
  }
  func.func @transform_1(%arg0: i32) -> (i32, i32, i32) {
    %c0_i32 = arith.constant 0 : i32
    %c0_i32_0 = arith.constant 0 : i32
    %c0_i32_1 = arith.constant 0 : i32
    return %c0_i32, %c0_i32_0, %arg0 : i32, i32, i32
  }
  func.func @transform_2(%arg0: i32) -> (i32, i32, i32) {
    %c0_i32 = arith.constant 0 : i32
    %c0_i32_0 = arith.constant 0 : i32
    %c0_i32_1 = arith.constant 0 : i32
    return %arg0, %c0_i32, %c0_i32_0 : i32, i32, i32
  }
}

</mosaic_0001>

<bundles_post_ra>
// kernel: embedding_trainer_forward.1
= control target key start
LH: loop header
LB: loop body
LE: loop exit
PB: predicated region body
PF: predicated region fallthrough
CT: control target
= control target key end

     0   :  { %7 = vsyncpa [#allocation3], 0  ;;  %s1268_s0 = inlined_call_operand.vmem [shape: f32[22,35], index: 0, kind: input, shape index: {}]   ;;  %s1269_s1 = inlined_call_operand.vmem [shape: f32[5,64,128], index: 1, kind: input, shape index: {}]   ;;  %s1270_s2 = inlined_call_operand.vmem [shape: f32[1,1,128], index: 2, kind: output, shape index: {}]  }
   0x1   :  { %s13_s11 = sshll.u32 %s1268_s0, 4  ;;  %s14_s11 = int_to_ptr.vmem [resolvable:$true] %s13_s11 }
   0x2   :  { %s760_s12 = scalar_lea.vmem %s14_s11, 384  ;;  %p765_p1 = scmp.lt.s32.totalorder %s14_s11, %s14_s11 }
   0x3   :  { %p761_p0 = scmp.ne.s32.totalorder %s14_s11, %s760_s12  ;;  %p766_p2 = scmp.lt.s32.totalorder %s760_s12, %s760_s12 }
   0x5   :  { %p767_p3 = por %p766_p2, %p765_p1 }
   0x7   :  { %p768_p4 = pnand %p767_p3, %p761_p0 }
   0x9   :  { %771 = shalt.err (!%p768_p4)
}
   0xa   :  { %s822_s13 = smov [#allocation2]   ;;  %s823_s14 = smov 128  }
   0xb   :  { %s824_s15 = smov 8  }
   0xc   :  { %19 = dma.vmem_to_smem %s14_s11, 384, %s822_s13, [#allocation3], %s823_s14, %s823_s14, %s824_s15  }
   0xd   :  { %796 = dma.done.wait [#allocation3], 384  }
   0xe   :  { %797 = vsyncadd [#allocation3], 4294966912 }
   0xf   :  { %25 = sfence }
  0x10   :  { %v26_v0 = vlaneseq  ;;  %v825_v3 = vmov -1e+30   ;;  %v850_v5 = vmov 0.0   ;;  %s852_s0 = smov 0  }
  0x12   :  { %v27_v1 = vshrl.u32 %v26_v0, 7 }
  0x14   :  { %v844_v2 = vadd.s32 56, %v27_v1 }
  0x16   :  { %vm42_vm0 = vcmp.lt.s32.totalorder %v844_v2, 62 }
  0x17   :  { %v848_v4 = vsel %vm42_vm0, 0.0, %v825_v3 }
  0x18 LB: > { %s66_s16 = sld [smem:[#allocation2 + %s804_s0]]  ;;  %s93_s17 = sshra.s32 %s804_s0, 7  ;;  %v58_v6 = vld [vmem:[%s1269_s1] sm:$0xff]  ;;  %v59_v7 = vld [vmem:[%s1269_s1 + $0x8] sm:$0xff]  ;;  %v60_v8 = vld [vmem:[%s1269_s1 + $0x10] sm:$0xff]  ;;  %s804_s0 = sphi %s852_s0, %s56_s0   ;;  %v800_v5 = vphi %v850_v5, %v1271_v5  }
  0x19   : > { %s862_s18 = sshll.u32 %s93_s17, 7  ;;  %s865_s19 = sand.u32 127, %s804_s0  ;;  %v65_v9 = vld [vmem:[%s1269_s1 + $0x38] sm:$0xff]  ;;  %v62_v11 = vld [vmem:[%s1269_s1 + $0x20] sm:$0xff]  ;;  %v63_v12 = vld [vmem:[%s1269_s1 + $0x28] sm:$0xff] }
  0x1a   : > { %s675_s20 = sadd.s32 128, %s862_s18  ;;  %s677_s21 = sadd.s32 256, %s862_s18  ;;  %v61_v10 = vld [vmem:[%s1269_s1 + $0x18] sm:$0xff]  ;;  %v64_v14 = vld [vmem:[%s1269_s1 + $0x30] sm:$0xff]  ;;  %v584_v15 = vld [vmem:[%s1269_s1 + $0x40] sm:$0xff] }
  0x1b   : > { %s99_s22 = sadd.s32 %s675_s20, %s865_s19  ;;  %s129_s23 = sadd.s32 %s677_s21, %s865_s19  ;;  %v585_v16 = vld [vmem:[%s1269_s1 + $0x48] sm:$0xff]  ;;  %v586_v20 = vld [vmem:[%s1269_s1 + $0x50] sm:$0xff]  ;;  %v587_v21 = vld [vmem:[%s1269_s1 + $0x58] sm:$0xff] }
  0x1c   : > { %s100_s26 = sld [smem:[#allocation2 + %s99_s22]]  ;;  %v588_v22 = vld [vmem:[%s1269_s1 + $0x60] sm:$0xff]  ;;  %v589_v27 = vld [vmem:[%s1269_s1 + $0x68] sm:$0xff]  ;;  %v590_v28 = vld [vmem:[%s1269_s1 + $0x70] sm:$0xff]  ;;  %s681_s24 = sadd.s32 2304, %s862_s18 }
  0x1d   : > { %s130_s27 = sld [smem:[#allocation2 + %s129_s23]]  ;;  %v591_v29 = vld [vmem:[%s1269_s1 + $0x78] sm:$0xff]  ;;  %v593_v38 = vld [vmem:[%s1269_s1 + $0x80] sm:$0xff]  ;;  %v594_v39 = vld [vmem:[%s1269_s1 + $0x88] sm:$0xff]  ;;  %s170_s28 = sadd.s32 %s681_s24, %s865_s19 }
  0x1e   : > { %v67_v13 = vstv %s66_s16  ;;  %v595_v44 = vld [vmem:[%s1269_s1 + $0x90] sm:$0xff]  ;;  %v596_v45 = vld [vmem:[%s1269_s1 + $0x98] sm:$0xff]  ;;  %v597_v46 = vld [vmem:[%s1269_s1 + $0xa0] sm:$0xff]  ;;  %s679_s16 = sadd.s32 1920, %s862_s18  ;;  %s171_s29 = sld [smem:[#allocation2 + %s170_s28]] }
  0x1f   : > { %v68_v17 = vmul.f32 %v67_v13, %v58_v6  ;;  %v69_v18 = vmul.f32 %v67_v13, %v59_v7  ;;  %v75_v19 = vmul.f32 %v67_v13, %v65_v9  ;;  %v70_v23 = vmul.f32 %v67_v13, %v60_v8  ;;  %v598_v51 = vld [vmem:[%s1269_s1 + $0xa8] sm:$0xff]  ;;  %v599_v52 = vld [vmem:[%s1269_s1 + $0xb0] sm:$0xff]  ;;  %v600_v53 = vld [vmem:[%s1269_s1 + $0xb8] sm:$0xff]  ;;  %s163_s23 = sadd.s32 %s679_s16, %s865_s19  ;;  %s56_s0 = sadd.s32 1, %s804_s0  }
  0x20   : > { %v71_v24 = vmul.f32 %v67_v13, %v61_v10  ;;  %v72_v25 = vmul.f32 %v67_v13, %v62_v11  ;;  %v73_v26 = vmul.f32 %v67_v13, %v63_v12  ;;  %v74_v30 = vmul.f32 %v67_v13, %v64_v14  ;;  %s164_s25 = sld [smem:[#allocation2 + %s163_s23]]  ;;  %p53_p5 = scmp.ge.s32.totalorder %s56_s0, 35  }
  0x21   : > { %v83_v31 = vadd.f32 %v75_v19, %v848_v4  ;;  %vm182_vm1 = vcmp.lt.s32.totalorder (%p53_p5), %v844_v2, 61  ;;  %s960_s18 = smov (%p53_p5), 0  }
  0x22   : > { %v101_v32 = vstv %s100_s26 }
  0x23   : > { %v131_v33 = vstv %s130_s27  ;;  %v102_v34 = vmul.f32 %v584_v15, %v101_v32  ;;  %v103_v35 = vmul.f32 %v585_v16, %v101_v32  ;;  %v104_v36 = vmul.f32 %v586_v20, %v101_v32 }
  0x24   : > { %v105_v37 = vmul.f32 %v587_v21, %v101_v32  ;;  %v106_v40 = vmul.f32 %v588_v22, %v101_v32  ;;  %v107_v41 = vmul.f32 %v589_v27, %v101_v32  ;;  %v108_v42 = vmul.f32 %v590_v28, %v101_v32 }
  0x25   : > { %v109_v43 = vmul.f32 %v591_v29, %v101_v32  ;;  %v110_v47 = vadd.f32 %v102_v34, %v68_v17  ;;  %v111_v48 = vadd.f32 %v103_v35, %v69_v18  ;;  %v112_v49 = vadd.f32 %v104_v36, %v70_v23 }
  0x26   : > { %v113_v50 = vadd.f32 %v105_v37, %v71_v24  ;;  %v114_v54 = vadd.f32 %v106_v40, %v72_v25  ;;  %v115_v55 = vadd.f32 %v107_v41, %v73_v26  ;;  %v116_v56 = vadd.f32 %v108_v42, %v74_v30 }
  0x27   : > { %v117_v57 = vadd.f32 %v109_v43, %v83_v31  ;;  %v132_v58 = vmul.f32 %v593_v38, %v131_v33  ;;  %v133_v59 = vmul.f32 %v594_v39, %v131_v33  ;;  %v134_v60 = vmul.f32 %v595_v44, %v131_v33 }
  0x28   : > { %v135_v61 = vmul.f32 %v596_v45, %v131_v33  ;;  %v136_v62 = vmul.f32 %v597_v46, %v131_v33  ;;  %v137_v63 = vmul.f32 %v598_v51, %v131_v33  ;;  %v138_v0 = vmul.f32 %v599_v52, %v131_v33 }
  0x29   : > { %v139_v1 = vmul.f32 %v600_v53, %v131_v33  ;;  %v140_v6 = vadd.f32 %v132_v58, %v110_v47  ;;  %v141_v7 = vadd.f32 %v133_v59, %v111_v48  ;;  %v142_v8 = vadd.f32 %v134_v60, %v112_v49 }
  0x2a   : > { %v143_v9 = vadd.f32 %v135_v61, %v113_v50  ;;  %v144_v10 = vadd.f32 %v136_v62, %v114_v54  ;;  %v145_v11 = vadd.f32 %v137_v63, %v115_v55  ;;  %v146_v12 = vadd.f32 %v138_v0, %v116_v56 }
  0x2b   : > { %v147_v13 = vadd.f32 %v139_v1, %v117_v57  ;;  %v165_v26 = vstv %s164_s25  ;;  %v172_v29 = vstv %s171_s29  ;;  %v956_v33 = vsel (%p53_p5), %vm182_vm1, 0.0, %v825_v3 }
  0x2c   : > { %v148_v14 = vmax.f32 %v140_v6, %v144_v10  ;;  %v149_v15 = vmax.f32 %v141_v7, %v145_v11  ;;  %v150_v16 = vmax.f32 %v142_v8, %v146_v12 }
  0x2d   : > { %v151_v17 = vmax.f32 %v143_v9, %v147_v13 }
  0x2e   : > { %v152_v18 = vmax.f32 %v148_v14, %v149_v15 }
  0x2f   : > { %v153_v19 = vmax.f32 %v150_v16, %v151_v17 }
  0x31   : > { %v154_v20 = vmax.f32 %v152_v18, %v153_v19 }
  0x33   : > { %v155_v21 = vrot.slane %v154_v20, 4 }
  0x35   : > { %v156_v22 = vmax.f32 %v154_v20, %v155_v21 }
  0x37   : > { %v157_v23 = vrot.slane %v156_v22, 2 }
  0x39   : > { %v158_v24 = vmax.f32 %v156_v22, %v157_v23 }
  0x3b   : > { %v159_v25 = vrot.slane %v158_v24, 1 }
  0x3d   : > { %v160_v27 = vmax.f32 %v158_v24, %v159_v25 }
  0x3f   : > { %v166_v28 = vadd.f32 %v165_v26, %v160_v27 }
  0x41   : > { %v167_v30 = vmax.f32 %v166_v28, 0.0  ;;  %55 = sbr.rel (!%p53_p5) target bundleno = 24 (0x18), region = 62 }
  0x43   : > { %v173_v31 = vmul.f32 %v172_v29, %v167_v30 }
  0x45   : > { %v174_v32 = vadd.f32 %v800_v5, %v173_v31  }
  0x47   : > { %v1271_v5 = vmov %v174_v32 }
  0x48 LB: > { %s206_s0 = sshra.s32 %s812_s18, 7  ;;  %s970_s19 = sand.u32 127, %s812_s18  ;;  %v198_v4 = vld [vmem:[%s1269_s1] sm:$0xff]  ;;  %v199_v5 = vld [vmem:[%s1269_s1 + $0x8] sm:$0xff]  ;;  %v200_v34 = vld [vmem:[%s1269_s1 + $0x10] sm:$0xff]  ;;  %s812_s18 = sphi %s960_s18, %s196_s18   ;;  %v808_v32 = vphi %v174_v32, %v1272_v32  }
  0x49   : > { %s972_s30 = sshll.u32 %s206_s0, 7  ;;  %v201_v35 = vld [vmem:[%s1269_s1 + $0x18] sm:$0xff]  ;;  %v202_v36 = vld [vmem:[%s1269_s1 + $0x20] sm:$0xff]  ;;  %v203_v37 = vld [vmem:[%s1269_s1 + $0x28] sm:$0xff]  ;;  %s196_s18 = sadd.s32 1, %s812_s18  }
  0x4a   : > { %s683_s3 = sadd.s32 640, %s972_s30  ;;  %s685_s4 = sadd.s32 768, %s972_s30  ;;  %v204_v38 = vld [vmem:[%s1269_s1 + $0x30] sm:$0xff]  ;;  %v205_v39 = vld [vmem:[%s1269_s1 + $0x38] sm:$0xff]  ;;  %v605_v40 = vld [vmem:[%s1269_s1 + $0x40] sm:$0xff] }
  0x4b   : > { %s212_s5 = sadd.s32 %s683_s3, %s970_s19  ;;  %s242_s6 = sadd.s32 %s685_s4, %s970_s19  ;;  %v606_v41 = vld [vmem:[%s1269_s1 + $0x48] sm:$0xff]  ;;  %v607_v43 = vld [vmem:[%s1269_s1 + $0x50] sm:$0xff]  ;;  %v608_v44 = vld [vmem:[%s1269_s1 + $0x58] sm:$0xff] }
  0x4c   : > { %s213_s7 = sld [smem:[#allocation2 + %s212_s5]]  ;;  %s687_s9 = sadd.s32 896, %s972_s30  ;;  %v609_v50 = vld [vmem:[%s1269_s1 + $0x60] sm:$0xff]  ;;  %v610_v51 = vld [vmem:[%s1269_s1 + $0x68] sm:$0xff]  ;;  %v611_v52 = vld [vmem:[%s1269_s1 + $0x70] sm:$0xff] }
  0x4d   : > { %s243_s8 = sld [smem:[#allocation2 + %s242_s6]]  ;;  %s689_s10 = sadd.s32 1024, %s972_s30  ;;  %v612_v57 = vld [vmem:[%s1269_s1 + $0x78] sm:$0xff]  ;;  %v614_v6 = vld [vmem:[%s1269_s1 + $0x80] sm:$0xff]  ;;  %v615_v7 = vld [vmem:[%s1269_s1 + $0x88] sm:$0xff] }
  0x4e   : > { %s272_s27 = sadd.s32 %s687_s9, %s970_s19  ;;  %s302_s12 = sadd.s32 %s689_s10, %s970_s19  ;;  %v616_v11 = vld [vmem:[%s1269_s1 + $0x90] sm:$0xff]  ;;  %v617_v12 = vld [vmem:[%s1269_s1 + $0x98] sm:$0xff]  ;;  %v618_v13 = vld [vmem:[%s1269_s1 + $0xa0] sm:$0xff] }
  0x4f   : > { %s1012_s9 = sld [smem:[#allocation2 + %s272_s27]]  ;;  %v619_v18 = vld [vmem:[%s1269_s1 + $0xa8] sm:$0xff]  ;;  %v620_v19 = vld [vmem:[%s1269_s1 + $0xb0] sm:$0xff]  ;;  %v621_v20 = vld [vmem:[%s1269_s1 + $0xb8] sm:$0xff]  ;;  %s691_s29 = sadd.s32 2048, %s972_s30 }
  0x50   : > { %s1014_s10 = sld [smem:[#allocation2 + %s302_s12]]  ;;  %v623_v29 = vld [vmem:[%s1269_s1 + $0xc0] sm:$0xff]  ;;  %v624_v30 = vld [vmem:[%s1269_s1 + $0xc8] sm:$0xff]  ;;  %s336_s0 = sadd.s32 %s691_s29, %s970_s19 }
  0x51   : > { %s693_s3 = sadd.s32 2432, %s972_s30  ;;  %s337_s4 = sld [smem:[#allocation2 + %s336_s0]] }
  0x52   : > { %v214_v42 = vstv %s213_s7  ;;  %s343_s5 = sadd.s32 %s693_s3, %s970_s19  ;;  %p193_p6 = scmp.ge.s32.totalorder %s196_s18, 35  }
  0x53   : > { %v244_v45 = vstv %s243_s8  ;;  %v215_v46 = vmul.f32 %v214_v42, %v198_v4  ;;  %v216_v47 = vmul.f32 %v214_v42, %v199_v5  ;;  %v217_v48 = vmul.f32 %v214_v42, %v200_v34  ;;  %s344_s6 = sld [smem:[#allocation2 + %s343_s5]]  ;;  %s1101_s19 = smov (%p193_p6), 0  }
  0x54   : > { %v218_v49 = vmul.f32 %v214_v42, %v201_v35  ;;  %v219_v53 = vmul.f32 %v214_v42, %v202_v36  ;;  %v220_v54 = vmul.f32 %v214_v42, %v203_v37  ;;  %v221_v55 = vmul.f32 %v214_v42, %v204_v38  ;;  %v625_v35 = vld [vmem:[%s1269_s1 + $0xd0] sm:$0xff]  ;;  %v626_v36 = vld [vmem:[%s1269_s1 + $0xd8] sm:$0xff]  ;;  %v627_v37 = vld [vmem:[%s1269_s1 + $0xe0] sm:$0xff] }
  0x55   : > { %v222_v56 = vmul.f32 %v214_v42, %v205_v39  ;;  %v245_v58 = vmul.f32 %v605_v40, %v244_v45  ;;  %v246_v59 = vmul.f32 %v606_v41, %v244_v45  ;;  %v247_v60 = vmul.f32 %v607_v43, %v244_v45  ;;  %v628_v42 = vld [vmem:[%s1269_s1 + $0xe8] sm:$0xff]  ;;  %v629_v43 = vld [vmem:[%s1269_s1 + $0xf0] sm:$0xff] }
  0x56   : > { %v248_v61 = vmul.f32 %v608_v44, %v244_v45  ;;  %v249_v63 = vmul.f32 %v609_v50, %v244_v45  ;;  %v250_v0 = vmul.f32 %v610_v51, %v244_v45  ;;  %v251_v1 = vmul.f32 %v611_v52, %v244_v45  ;;  %v630_v44 = vld [vmem:[%s1269_s1 + $0xf8] sm:$0xff] }
  0x57   : > { %v230_v62 = vadd.f32 %v222_v56, %v956_v33  ;;  %v252_v8 = vmul.f32 %v612_v57, %v244_v45  ;;  %v253_v9 = vadd.f32 %v245_v58, %v215_v46  ;;  %v254_v10 = vadd.f32 %v246_v59, %v216_v47 }
  0x58   : > { %v255_v14 = vadd.f32 %v247_v60, %v217_v48  ;;  %v256_v15 = vadd.f32 %v248_v61, %v218_v49  ;;  %v257_v16 = vadd.f32 %v249_v63, %v219_v53  ;;  %v258_v17 = vadd.f32 %v250_v0, %v220_v54 }
  0x59   : > { %v259_v21 = vadd.f32 %v251_v1, %v221_v55  ;;  %v260_v22 = vadd.f32 %v252_v8, %v230_v62  ;;  %v274_v23 = vstv %s1012_s9  ;;  %v304_v24 = vstv %s1014_s10 }
  0x5a   : > { %v275_v25 = vmul.f32 %v614_v6, %v274_v23  ;;  %v276_v26 = vmul.f32 %v615_v7, %v274_v23  ;;  %v277_v27 = vmul.f32 %v616_v11, %v274_v23  ;;  %v278_v28 = vmul.f32 %v617_v12, %v274_v23 }
  0x5b   : > { %v279_v31 = vmul.f32 %v618_v13, %v274_v23  ;;  %v280_v4 = vmul.f32 %v619_v18, %v274_v23  ;;  %v281_v5 = vmul.f32 %v620_v19, %v274_v23  ;;  %v282_v34 = vmul.f32 %v621_v20, %v274_v23 }
  0x5c   : > { %v283_v38 = vadd.f32 %v275_v25, %v253_v9  ;;  %v284_v39 = vadd.f32 %v276_v26, %v254_v10  ;;  %v285_v40 = vadd.f32 %v277_v27, %v255_v14  ;;  %v286_v41 = vadd.f32 %v278_v28, %v256_v15 }
  0x5d   : > { %v287_v45 = vadd.f32 %v279_v31, %v257_v16  ;;  %v288_v46 = vadd.f32 %v280_v4, %v258_v17  ;;  %v289_v47 = vadd.f32 %v281_v5, %v259_v21  ;;  %v290_v48 = vadd.f32 %v282_v34, %v260_v22 }
  0x5e   : > { %v305_v49 = vmul.f32 %v623_v29, %v304_v24  ;;  %v306_v50 = vmul.f32 %v624_v30, %v304_v24  ;;  %v307_v51 = vmul.f32 %v625_v35, %v304_v24  ;;  %v308_v52 = vmul.f32 %v626_v36, %v304_v24 }
  0x5f   : > { %v309_v53 = vmul.f32 %v627_v37, %v304_v24  ;;  %v310_v54 = vmul.f32 %v628_v42, %v304_v24  ;;  %v311_v55 = vmul.f32 %v629_v43, %v304_v24  ;;  %v312_v56 = vmul.f32 %v630_v44, %v304_v24 }
  0x60   : > { %v313_v57 = vadd.f32 %v305_v49, %v283_v38  ;;  %v314_v58 = vadd.f32 %v306_v50, %v284_v39  ;;  %v315_v59 = vadd.f32 %v307_v51, %v285_v40  ;;  %v316_v60 = vadd.f32 %v308_v52, %v286_v41 }
  0x61   : > { %v317_v61 = vadd.f32 %v309_v53, %v287_v45  ;;  %v318_v62 = vadd.f32 %v310_v54, %v288_v46  ;;  %v319_v63 = vadd.f32 %v311_v55, %v289_v47  ;;  %v320_v0 = vadd.f32 %v312_v56, %v290_v48 }
  0x62   : > { %v338_v17 = vstv %s337_s4  ;;  %v345_v20 = vstv %s344_s6  ;;  %vm355_vm2 = vcmp.lt.s32.totalorder (%p193_p6), %v844_v2, 60 }
  0x63   : > { %v321_v1 = vmax.f32 %v313_v57, %v317_v61  ;;  %v322_v6 = vmax.f32 %v314_v58, %v318_v62  ;;  %v323_v7 = vmax.f32 %v315_v59, %v319_v63  ;;  %v324_v8 = vmax.f32 %v316_v60, %v320_v0 }
  0x64   :  { %v1097_v24 = vsel (%p193_p6), %vm355_vm2, 0.0, %v825_v3 }
  0x65   : > { %v325_v9 = vmax.f32 %v321_v1, %v322_v6  ;;  %v326_v10 = vmax.f32 %v323_v7, %v324_v8 }
  0x67   : > { %v327_v11 = vmax.f32 %v325_v9, %v326_v10 }
  0x69   : > { %v328_v12 = vrot.slane %v327_v11, 4 }
  0x6b   : > { %v329_v13 = vmax.f32 %v327_v11, %v328_v12 }
  0x6d   : > { %v330_v14 = vrot.slane %v329_v13, 2 }
  0x6f   : > { %v331_v15 = vmax.f32 %v329_v13, %v330_v14 }
  0x71   : > { %v332_v16 = vrot.slane %v331_v15, 1 }
  0x73   : > { %v333_v18 = vmax.f32 %v331_v15, %v332_v16 }
  0x75   : > { %v339_v19 = vadd.f32 %v338_v17, %v333_v18 }
  0x77   : > { %v340_v21 = vmax.f32 %v339_v19, 0.0  ;;  %195 = sbr.rel (!%p193_p6) target bundleno = 72 (0x48), region = 73 }
  0x79   : > { %v346_v22 = vmul.f32 %v345_v20, %v340_v21 }
  0x7b   : > { %v347_v23 = vadd.f32 %v808_v32, %v346_v22  }
  0x7d   : > { %v1272_v32 = vmov %v347_v23 }
  0x7e LB: > { %s379_s18 = sshra.s32 %s820_s19, 7  ;;  %s1111_s30 = sand.u32 127, %s820_s19  ;;  %v371_v2 = vld [vmem:[%s1269_s1] sm:$0xff]  ;;  %v372_v3 = vld [vmem:[%s1269_s1 + $0x8] sm:$0xff]  ;;  %v373_v32 = vld [vmem:[%s1269_s1 + $0x10] sm:$0xff]  ;;  %s820_s19 = sphi %s1101_s19, %s369_s19   ;;  %v816_v23 = vphi %v347_v23, %v1273_v23  }
  0x7f   : > { %s1113_s11 = sshll.u32 %s379_s18, 7  ;;  %v374_v33 = vld [vmem:[%s1269_s1 + $0x18] sm:$0xff]  ;;  %v375_v25 = vld [vmem:[%s1269_s1 + $0x20] sm:$0xff]  ;;  %v376_v26 = vld [vmem:[%s1269_s1 + $0x28] sm:$0xff]  ;;  %s369_s19 = sadd.s32 1, %s820_s19  }
  0x80   : > { %s695_s26 = sadd.s32 1280, %s1113_s11  ;;  %s697_s13 = sadd.s32 1408, %s1113_s11  ;;  %v377_v27 = vld [vmem:[%s1269_s1 + $0x30] sm:$0xff]  ;;  %v378_v28 = vld [vmem:[%s1269_s1 + $0x38] sm:$0xff]  ;;  %v635_v29 = vld [vmem:[%s1269_s1 + $0x40] sm:$0xff] }
  0x81   : > { %s385_s14 = sadd.s32 %s695_s26, %s1111_s30  ;;  %s415_s15 = sadd.s32 %s697_s13, %s1111_s30  ;;  %v636_v30 = vld [vmem:[%s1269_s1 + $0x48] sm:$0xff]  ;;  %v637_v4 = vld [vmem:[%s1269_s1 + $0x50] sm:$0xff]  ;;  %v638_v5 = vld [vmem:[%s1269_s1 + $0x58] sm:$0xff] }
  0x82   : > { %s386_s17 = sld [smem:[#allocation2 + %s385_s14]]  ;;  %s699_s12 = sadd.s32 1536, %s1113_s11  ;;  %v639_v39 = vld [vmem:[%s1269_s1 + $0x60] sm:$0xff]  ;;  %v640_v40 = vld [vmem:[%s1269_s1 + $0x68] sm:$0xff]  ;;  %v641_v41 = vld [vmem:[%s1269_s1 + $0x70] sm:$0xff] }
  0x83   : > { %s416_s27 = sld [smem:[#allocation2 + %s415_s15]]  ;;  %s701_s7 = sadd.s32 1664, %s1113_s11  ;;  %v642_v46 = vld [vmem:[%s1269_s1 + $0x78] sm:$0xff]  ;;  %v644_v55 = vld [vmem:[%s1269_s1 + $0x80] sm:$0xff]  ;;  %v645_v56 = vld [vmem:[%s1269_s1 + $0x88] sm:$0xff] }
  0x84   : > { %s445_s10 = sadd.s32 %s699_s12, %s1111_s30  ;;  %s475_s8 = sadd.s32 %s701_s7, %s1111_s30  ;;  %v646_v61 = vld [vmem:[%s1269_s1 + $0x90] sm:$0xff]  ;;  %v647_v62 = vld [vmem:[%s1269_s1 + $0x98] sm:$0xff]  ;;  %v648_v63 = vld [vmem:[%s1269_s1 + $0xa0] sm:$0xff] }
  0x85   : > { %s1144_s6 = sld [smem:[#allocation2 + %s445_s10]]  ;;  %s703_s18 = sadd.s32 1792, %s1113_s11  ;;  %v649_v8 = vld [vmem:[%s1269_s1 + $0xa8] sm:$0xff]  ;;  %v650_v9 = vld [vmem:[%s1269_s1 + $0xb0] sm:$0xff]  ;;  %v651_v10 = vld [vmem:[%s1269_s1 + $0xb8] sm:$0xff] }
  0x86   : > { %s1156_s20 = sld [smem:[#allocation2 + %s475_s8]]  ;;  %s505_s9 = sadd.s32 %s703_s18, %s1111_s30  ;;  %v653_v19 = vld [vmem:[%s1269_s1 + $0xc0] sm:$0xff]  ;;  %v654_v20 = vld [vmem:[%s1269_s1 + $0xc8] sm:$0xff] }
  0x87   : > { %s1165_s23 = sld [smem:[#allocation2 + %s505_s9]]  ;;  %p366_p7 = scmp.ge.s32.totalorder %s369_s19, 35  }
  0x88   : > { %v387_v31 = vstv %s386_s17 }
  0x89   : > { %v417_v34 = vstv %s416_s27  ;;  %v388_v35 = vmul.f32 %v387_v31, %v371_v2  ;;  %v389_v36 = vmul.f32 %v387_v31, %v372_v3  ;;  %v390_v37 = vmul.f32 %v387_v31, %v373_v32  ;;  %v655_v32 = vld [vmem:[%s1269_s1 + $0xd0] sm:$0xff]  ;;  %s707_s27 = sadd.s32 2560, %s1113_s11 }
  0x8a   : > { %v391_v38 = vmul.f32 %v387_v31, %v374_v33  ;;  %v392_v42 = vmul.f32 %v387_v31, %v375_v25  ;;  %v393_v43 = vmul.f32 %v387_v31, %v376_v26  ;;  %v394_v44 = vmul.f32 %v387_v31, %v377_v27  ;;  %v656_v33 = vld [vmem:[%s1269_s1 + $0xd8] sm:$0xff]  ;;  %v657_v25 = vld [vmem:[%s1269_s1 + $0xe0] sm:$0xff]  ;;  %s546_s3 = sadd.s32 %s707_s27, %s1111_s30 }
  0x8b   : > { %v395_v45 = vmul.f32 %v387_v31, %v378_v28  ;;  %v418_v47 = vmul.f32 %v635_v29, %v417_v34  ;;  %v419_v48 = vmul.f32 %v636_v30, %v417_v34  ;;  %v420_v49 = vmul.f32 %v637_v4, %v417_v34  ;;  %v658_v30 = vld [vmem:[%s1269_s1 + $0xe8] sm:$0xff]  ;;  %v659_v31 = vld [vmem:[%s1269_s1 + $0xf0] sm:$0xff]  ;;  %v660_v4 = vld [vmem:[%s1269_s1 + $0xf8] sm:$0xff]  ;;  %s547_s4 = sld [smem:[#allocation2 + %s546_s3]] }
  0x8c   : > { %v421_v50 = vmul.f32 %v638_v5, %v417_v34  ;;  %v422_v52 = vmul.f32 %v639_v39, %v417_v34  ;;  %v423_v53 = vmul.f32 %v640_v40, %v417_v34  ;;  %v424_v54 = vmul.f32 %v641_v41, %v417_v34  ;;  %v662_v41 = vld [vmem:[%s1269_s1 + $0x100] sm:$0xff] }
  0x8d   : > { %v403_v51 = vadd.f32 %v395_v45, %v1097_v24  ;;  %v425_v57 = vmul.f32 %v642_v46, %v417_v34  ;;  %v426_v58 = vadd.f32 %v418_v47, %v388_v35  ;;  %v427_v59 = vadd.f32 %v419_v48, %v389_v36  ;;  %v664_v47 = vld [vmem:[%s1269_s1 + $0x110] sm:$0xff]  ;;  %v665_v48 = vld [vmem:[%s1269_s1 + $0x118] sm:$0xff] }
  0x8e   : > { %v428_v60 = vadd.f32 %v420_v49, %v390_v37  ;;  %v429_v0 = vadd.f32 %v421_v50, %v391_v38  ;;  %v430_v1 = vadd.f32 %v422_v52, %v392_v42  ;;  %v431_v6 = vadd.f32 %v423_v53, %v393_v43  ;;  %v663_v42 = vld [vmem:[%s1269_s1 + $0x108] sm:$0xff]  ;;  %v666_v49 = vld [vmem:[%s1269_s1 + $0x120] sm:$0xff] }
  0x8f   : > { %v432_v7 = vadd.f32 %v424_v54, %v394_v44  ;;  %v433_v11 = vadd.f32 %v425_v57, %v403_v51  ;;  %v447_v12 = vstv %s1144_s6  ;;  %v477_v13 = vstv %s1156_s20  ;;  %v667_v54 = vld [vmem:[%s1269_s1 + $0x128] sm:$0xff]  ;;  %s705_s20 = sadd.s32 2176, %s1113_s11 }
  0x90   : > { %v507_v14 = vstv %s1165_s23  ;;  %v448_v15 = vmul.f32 %v644_v55, %v447_v12  ;;  %v449_v16 = vmul.f32 %v645_v56, %v447_v12  ;;  %v450_v17 = vmul.f32 %v646_v61, %v447_v12  ;;  %v668_v55 = vld [vmem:[%s1269_s1 + $0x130] sm:$0xff]  ;;  %v669_v56 = vld [vmem:[%s1269_s1 + $0x138] sm:$0xff]  ;;  %s539_s23 = sadd.s32 %s705_s20, %s1111_s30  ;;  %s673_s30 = sld [smem:[#allocation2 + $0xa80]] (%p366_p7) }
  0x91   : > { %v451_v18 = vmul.f32 %v647_v62, %v447_v12  ;;  %v452_v21 = vmul.f32 %v648_v63, %v447_v12  ;;  %v453_v22 = vmul.f32 %v649_v8, %v447_v12  ;;  %v454_v2 = vmul.f32 %v650_v9, %v447_v12  ;;  %s540_s0 = sld [smem:[#allocation2 + %s539_s23]] }
  0x92   : > { %v455_v3 = vmul.f32 %v651_v10, %v447_v12  ;;  %v456_v26 = vadd.f32 %v448_v15, %v426_v58  ;;  %v457_v27 = vadd.f32 %v449_v16, %v427_v59  ;;  %v458_v28 = vadd.f32 %v450_v17, %v428_v60 }
  0x93   : > { %v459_v29 = vadd.f32 %v451_v18, %v429_v0  ;;  %v460_v5 = vadd.f32 %v452_v21, %v430_v1  ;;  %v461_v34 = vadd.f32 %v453_v22, %v431_v6  ;;  %v462_v35 = vadd.f32 %v454_v2, %v432_v7 }
  0x94   : > { %v463_v36 = vadd.f32 %v455_v3, %v433_v11  ;;  %v478_v37 = vmul.f32 %v653_v19, %v477_v13  ;;  %v479_v38 = vmul.f32 %v654_v20, %v477_v13  ;;  %v480_v39 = vmul.f32 %v655_v32, %v477_v13 }
  0x95   : > { %v481_v40 = vmul.f32 %v656_v33, %v477_v13  ;;  %v482_v43 = vmul.f32 %v657_v25, %v477_v13  ;;  %v483_v44 = vmul.f32 %v658_v30, %v477_v13  ;;  %v484_v45 = vmul.f32 %v659_v31, %v477_v13 }
  0x96   : > { %v485_v46 = vmul.f32 %v660_v4, %v477_v13  ;;  %v486_v50 = vadd.f32 %v478_v37, %v456_v26  ;;  %v487_v51 = vadd.f32 %v479_v38, %v457_v27  ;;  %v488_v52 = vadd.f32 %v480_v39, %v458_v28 }
  0x97   : > { %v489_v53 = vadd.f32 %v481_v40, %v459_v29  ;;  %v490_v57 = vadd.f32 %v482_v43, %v460_v5  ;;  %v491_v58 = vadd.f32 %v483_v44, %v461_v34  ;;  %v492_v59 = vadd.f32 %v484_v45, %v462_v35 }
  0x98   : > { %v493_v60 = vadd.f32 %v485_v46, %v463_v36  ;;  %v508_v61 = vmul.f32 %v662_v41, %v507_v14  ;;  %v509_v62 = vmul.f32 %v663_v42, %v507_v14  ;;  %v510_v63 = vmul.f32 %v664_v47, %v507_v14 }
  0x99   : > { %v511_v0 = vmul.f32 %v665_v48, %v507_v14  ;;  %v512_v1 = vmul.f32 %v666_v49, %v507_v14  ;;  %v513_v6 = vmul.f32 %v667_v54, %v507_v14  ;;  %v514_v7 = vmul.f32 %v668_v55, %v507_v14 }
  0x9a   : > { %v515_v8 = vmul.f32 %v669_v56, %v507_v14  ;;  %v516_v9 = vadd.f32 %v508_v61, %v486_v50  ;;  %v517_v10 = vadd.f32 %v509_v62, %v487_v51  ;;  %v518_v11 = vadd.f32 %v510_v63, %v488_v52 }
  0x9b   : > { %v519_v12 = vadd.f32 %v511_v0, %v489_v53  ;;  %v520_v13 = vadd.f32 %v512_v1, %v490_v57  ;;  %v521_v15 = vadd.f32 %v513_v6, %v491_v58  ;;  %v522_v16 = vadd.f32 %v514_v7, %v492_v59 }
  0x9c   : > { %v523_v17 = vadd.f32 %v515_v8, %v493_v60  ;;  %v541_v27 = vstv %s540_s0  ;;  %v548_v30 = vstv %s547_s4  ;;  %v552_v34 = vstv (%p366_p7), %s673_s30 }
  0x9d   : > { %v524_v18 = vmax.f32 %v516_v9, %v520_v13  ;;  %v525_v19 = vmax.f32 %v517_v10, %v521_v15  ;;  %v526_v20 = vmax.f32 %v518_v11, %v522_v16 }
  0x9e   : > { %v527_v21 = vmax.f32 %v519_v12, %v523_v17 }
  0x9f   : > { %v528_v22 = vmax.f32 %v524_v18, %v525_v19 }
  0xa0   : > { %v529_v2 = vmax.f32 %v526_v20, %v527_v21 }
  0xa2   : > { %v530_v3 = vmax.f32 %v528_v22, %v529_v2 }
  0xa4   : > { %v531_v14 = vrot.slane %v530_v3, 4 }
  0xa6   : > { %v532_v32 = vmax.f32 %v530_v3, %v531_v14 }
  0xa8   : > { %v533_v33 = vrot.slane %v532_v32, 2 }
  0xaa   : > { %v534_v25 = vmax.f32 %v532_v32, %v533_v33 }
  0xac   : > { %v535_v26 = vrot.slane %v534_v25, 1 }
  0xae   : > { %v536_v28 = vmax.f32 %v534_v25, %v535_v26 }
  0xb0   : > { %v542_v29 = vadd.f32 %v541_v27, %v536_v28 }
  0xb2   : > { %v543_v31 = vmax.f32 %v542_v29, 0.0  ;;  %368 = sbr.rel (!%p366_p7) target bundleno = 126 (0x7e), region = 84 }
  0xb4   : > { %v549_v4 = vmul.f32 %v548_v30, %v543_v31 }
  0xb6   : > { %v550_v5 = vadd.f32 %v816_v23, %v549_v4  }
  0xb8   : > { %v1273_v23 = vmov %v550_v5  ;;  %v553_v35 = vadd.f32 (%p366_p7), %v552_v34, %v550_v5 }
  0xba   :  { %554 = vst [vmem:[%s1270_s2] sm:$0x1] %v553_v35 }
  0xbb   :  { %559 = vsyncpa [#allocation3], 1 }

</bundles_post_ra>
